<compile_context>
chip_gen: v5e
topology: v5e:2x2
jax: 0.10.0
libtpu: 0.0.40
codegen_flags: <defaults>
</compile_context>

<pallas_src>
import jax
import jax.numpy as jnp
from jax import lax
from jax.experimental import pallas as pl
from jax.experimental.pallas import tpu as pltpu


_MAX_POOL_CHUNK = 2048  # lanes per pooling chunk (bounds the f32 temporary)


def _pick_chunk(hw):
    """Largest 128-multiple divisor of hw that is <= _MAX_POOL_CHUNK, else the
    whole axis (keeps every dynamic lane slice 128-aligned)."""
    if hw <= _MAX_POOL_CHUNK:
        return hw, 1
    start = _MAX_POOL_CHUNK - (_MAX_POOL_CHUNK % 128)
    for c in range(start, 127, -128):
        if hw % c == 0:
            return c, hw // c
    return hw, 1  # no aligned divisor: single unchunked pass (f32 temp accounted)


def _chunked_pool_sum(x_ref):
    """f32 sum over the last (spatial) axis of a (B, C, HW) VMEM block,
    accumulated over 128-aligned chunks so no slab-sized f32 temp is built."""
    b, c, hw = x_ref.shape
    chunk, n_chunks = _pick_chunk(hw)
    if n_chunks == 1:
        return jnp.sum(x_ref[...].astype(jnp.float32), axis=-1)

    def body(j, acc):
        start = pl.multiple_of(j * chunk, 128)
        xc = x_ref[:, :, pl.ds(start, chunk)]
        return acc + jnp.sum(xc.astype(jnp.float32), axis=-1)

    return lax.fori_loop(0, n_chunks, body, jnp.zeros((b, c), jnp.float32),
                         unroll=(n_chunks <= 8))


# --------------------------- fused single-pass path ---------------------------


def _se_fused_kernel(x_ref, wt_ref, b_ref, o_ref):
    # x_ref: (nb, C, HW)   wt_ref: (C, C) bf16, pre-transposed   b_ref: (1, C) f32
    nb, c, hw = x_ref.shape

    pooled = _chunked_pool_sum(x_ref) * (1.0 / hw)                     # (nb, C) f32
    att = jax.nn.sigmoid(
        jnp.dot(pooled.astype(jnp.bfloat16), wt_ref[...],
                preferred_element_type=jnp.float32) + b_ref[...])      # (nb, C) f32
    gate = att.astype(o_ref.dtype)[:, :, None]                         # (nb, C, 1)

    chunk, n_chunks = _pick_chunk(hw)
    if n_chunks == 1:
        o_ref[...] = (x_ref[...] * gate).astype(o_ref.dtype)
    else:
        def body(j, carry):
            sl = pl.ds(pl.multiple_of(j * chunk, 128), chunk)
            o_ref[:, :, sl] = (x_ref[:, :, sl] * gate).astype(o_ref.dtype)
            return carry
        lax.fori_loop(0, n_chunks, body, 0, unroll=(n_chunks <= 8))


# --------------------- spatial-tiled fallback (2 kernels) ---------------------


def _pool_att_kernel(x_ref, wt_ref, b_ref, att_ref, acc_ref):
    # x_ref: (1, C, thw); acc_ref scratch: (1, C) f32; att_ref out: (1, C, 1) f32
    h = pl.program_id(1)
    n_h = pl.num_programs(1)
    _, c, thw = x_ref.shape

    @pl.when(h == 0)
    def _init():
        acc_ref[...] = jnp.zeros_like(acc_ref)

    acc_ref[...] += _chunked_pool_sum(x_ref)

    @pl.when(h == n_h - 1)
    def _finalize():
        pooled = acc_ref[...] * (1.0 / (thw * n_h))                    # (1, C) f32
        att = jax.nn.sigmoid(
            jnp.dot(pooled.astype(jnp.bfloat16), wt_ref[...],
                    preferred_element_type=jnp.float32) + b_ref[...])  # (1, C) f32
        att_ref[...] = att[:, :, None]                                 # (1, C, 1)


def _scale_kernel(x_ref, att_ref, o_ref):
    # x_ref: (1, C, thw); att_ref: (1, C, 1) f32
    gate = att_ref[...].astype(o_ref.dtype)
    o_ref[...] = (x_ref[...] * gate).astype(o_ref.dtype)


# ----------------------------------- wrapper ----------------------------------


def _vmem_capacity_bytes():
    try:
        cap = getattr(pltpu.get_tpu_info(), "vmem_capacity_bytes", None)
        if cap:
            return int(cap)
    except Exception:
        pass
    return 64 * 2 ** 20  # conservative default (v7x-sized)


def _vmem_limit_bytes(footprint, cap):
    return int(min(cap - 4 * 2 ** 20, max(footprint + 8 * 2 ** 20, 32 * 2 ** 20)))


def _divisors(n):
    out, i = set(), 1
    while i * i <= n:
        if n % i == 0:
            out.add(i)
            out.add(n // i)
        i += 1
    return sorted(out)


def se_block(x, w, b, *, vmem_budget_bytes=None):
    """SE_Block forward: out = x * sigmoid(conv1x1(mean_{H,W}(x))).

    x: (N, C, H, W); w: (C, C) 1x1-conv weight; b: (C,) bias.
    vmem_budget_bytes overrides the auto-detected VMEM slab budget (testing)."""
    N, C, H, W = x.shape
    HW = H * W
    itemsize = jnp.dtype(x.dtype).itemsize

    cap = _vmem_capacity_bytes()
    budget = int(cap * 3 // 4) if vmem_budget_bytes is None else int(vmem_budget_bytes)

    # Native layout: reshape only (free), no wrapper transposes.
    x2 = x.reshape(N, C, HW)
    # Weight pre-transposed (kernel computes pooled @ w.T) and bf16 for the MXU;
    # bias / sigmoid stay in f32.
    wt = jnp.asarray(w, jnp.float32).T.astype(jnp.bfloat16)
    b2 = jnp.asarray(b, jnp.float32).reshape(1, C)

    const_bytes = 2 * C * C * 2 + 2 * C * 4 + 64 * 1024  # dbl-buffered wt + bias + slack
    per_batch = C * HW * itemsize                         # one batch slab of x (or out)
    chunk, _ = _pick_chunk(HW)
    # double-buffered in + out slabs + the per-chunk f32 pooling temporary
    per_batch_vmem = 4 * per_batch + C * chunk * 4

    nb_fit = (budget - const_bytes) // per_batch_vmem if budget > const_bytes else 0

    if nb_fit >= 1:
        # -------- fused path: pool + 1x1 conv + sigmoid + scale, one HBM pass --------
        # Prefer >= 8 grid steps; merge batch elements only if slabs are < ~2 MiB.
        target_steps = 8
        min_slab = 2 * 2 ** 20
        nb_deep = max(1, N // target_steps)
        nb_minsz = max(1, -(-min_slab // per_batch))
        nb = max(1, min(int(nb_fit), N, max(nb_deep, nb_minsz)))
        while N % nb:
            nb -= 1

        footprint = nb * per_batch_vmem + const_bytes
        out = pl.pallas_call(
            _se_fused_kernel,
            out_shape=jax.ShapeDtypeStruct((N, C, HW), x.dtype),
            grid=(N // nb,),
            in_specs=[
                pl.BlockSpec((nb, C, HW), lambda n: (n, 0, 0)),
                pl.BlockSpec((C, C), lambda n: (0, 0)),
                pl.BlockSpec((1, C), lambda n: (0, 0)),
            ],
            out_specs=pl.BlockSpec((nb, C, HW), lambda n: (n, 0, 0)),
            compiler_params=pltpu.CompilerParams(
                dimension_semantics=("parallel",),
                vmem_limit_bytes=_vmem_limit_bytes(footprint, cap)),
        )(x2, wt, b2)
        return out.reshape(N, C, H, W)

    # -------- spatial-tiled fallback: one batch slab does not fit VMEM --------
    tile_limit = (budget - const_bytes) // max(1, C * (4 * itemsize + 4))
    divs = [d for d in _divisors(HW) if d <= tile_limit]
    if not divs:
        # TODO(synk): C alone exceeds the budget per spatial column; best-effort.
        divs = [HW]
    aligned = [d for d in divs if d % 128 == 0]
    thw = aligned[-1] if aligned else divs[-1]
    n_hw = HW // thw
    fb_foot = C * thw * (4 * itemsize + 4) + const_bytes
    vmem_limit = _vmem_limit_bytes(fb_foot, cap)

    # Pass 1: pooled sums over HW tiles ('arbitrary' axis, f32 scratch
    # accumulator), sigmoid(conv1x1) emitted on the last tile.
    att = pl.pallas_call(
        _pool_att_kernel,
        out_shape=jax.ShapeDtypeStruct((N, C, 1), jnp.float32),
        grid=(N, n_hw),
        in_specs=[
            pl.BlockSpec((1, C, thw), lambda n, h: (n, 0, h)),
            pl.BlockSpec((C, C), lambda n, h: (0, 0)),
            pl.BlockSpec((1, C), lambda n, h: (0, 0)),
        ],
        out_specs=pl.BlockSpec((1, C, 1), lambda n, h: (n, 0, 0)),
        scratch_shapes=[pltpu.VMEM((1, C), jnp.float32)],
        compiler_params=pltpu.CompilerParams(
            dimension_semantics=("parallel", "arbitrary"),
            vmem_limit_bytes=vmem_limit),
    )(x2, wt, b2)

    # Pass 2: apply the gate on a fully parallel (N, HW-tile) grid (keeps both
    # v7x TensorCores fed even when N == 1).
    out = pl.pallas_call(
        _scale_kernel,
        out_shape=jax.ShapeDtypeStruct((N, C, HW), x.dtype),
        grid=(N, n_hw),
        in_specs=[
            pl.BlockSpec((1, C, thw), lambda n, h: (n, 0, h)),
            pl.BlockSpec((1, C, 1), lambda n, h: (n, 0, 0)),
        ],
        out_specs=pl.BlockSpec((1, C, thw), lambda n, h: (n, 0, h)),
        compiler_params=pltpu.CompilerParams(
            dimension_semantics=("parallel", "parallel"),
            vmem_limit_bytes=vmem_limit),
    )(x2, att)
    return out.reshape(N, C, H, W)


def _se_ref(x, w, b):
    """Pure-JAX reference mirroring the PyTorch module (f32 gate math)."""
    pooled = x.astype(jnp.float32).mean(axis=(2, 3))                     # (N, C)
    att = jax.nn.sigmoid(pooled @ jnp.asarray(w, jnp.float32).T
                         + jnp.asarray(b, jnp.float32))                  # (N, C)
    return (x * att.astype(x.dtype)[:, :, None, None]).astype(x.dtype)


if __name__ == "__main__":
    key = jax.random.PRNGKey(0)
    # bf16 MXU is used for the (tiny) 1x1-conv gate matmul, so f32 cases are
    # checked to 2e-3 (gate error << 1e-3); bf16 activations to 5e-2.

    # Case 1: fused path, lane-aligned spatial axis (H*W = 256).
    k1, k2, k3, key = jax.random.split(key, 4)
    N, C, H, W = 2, 8, 16, 16
    x = jax.random.normal(k1, (N, C, H, W), dtype=jnp.float32)
    w = jax.random.normal(k2, (C, C), dtype=jnp.float32) * 0.1
    b = jax.random.normal(k3, (C,), dtype=jnp.float32) * 0.1
    out = jax.block_until_ready(se_block(x, w, b))
    ref = _se_ref(x, w, b)
    assert out.shape == x.shape and out.dtype == x.dtype
    assert jnp.allclose(out, ref, atol=2e-3, rtol=2e-3)

    # Case 2: fused path, H*W (=49) not a multiple of 128 (native layout kept,
    # masked tail stores; no wrapper transposes).
    k1, k2, k3, key = jax.random.split(key, 4)
    N, C, H, W = 2, 128, 7, 7
    x = jax.random.normal(k1, (N, C, H, W), dtype=jnp.float32)
    w = jax.random.normal(k2, (C, C), dtype=jnp.float32) * 0.05
    b = jax.random.normal(k3, (C,), dtype=jnp.float32) * 0.05
    out = jax.block_until_ready(se_block(x, w, b))
    ref = _se_ref(x, w, b)
    assert out.shape == x.shape and out.dtype == x.dtype
    assert jnp.allclose(out, ref, atol=2e-3, rtol=2e-3)

    # Case 3: bf16 activations (pool / conv / sigmoid accumulate in f32).
    k1, k2, k3, key = jax.random.split(key, 4)
    N, C, H, W = 2, 8, 16, 16
    x = jax.random.normal(k1, (N, C, H, W), dtype=jnp.float32).astype(jnp.bfloat16)
    w = jax.random.normal(k2, (C, C), dtype=jnp.float32) * 0.1
    b = jax.random.normal(k3, (C,), dtype=jnp.float32) * 0.1
    out = jax.block_until_ready(se_block(x, w, b))
    ref = _se_ref(x, w, b)
    assert out.dtype == jnp.bfloat16 and out.shape == x.shape
    assert jnp.allclose(out.astype(jnp.float32), ref.astype(jnp.float32),
                        atol=5e-2, rtol=5e-2)

    # Case 4: spatial-tiled fallback, forced via a tiny VMEM budget so the
    # pool+scale two-kernel path (HW tiles, scratch accumulator) is exercised.
    k1, k2, k3, key = jax.random.split(key, 4)
    N, C, H, W = 2, 16, 32, 32
    x = jax.random.normal(k1, (N, C, H, W), dtype=jnp.float32)
    w = jax.random.normal(k2, (C, C), dtype=jnp.float32) * 0.1
    b = jax.random.normal(k3, (C,), dtype=jnp.float32) * 0.1
    out = jax.block_until_ready(se_block(x, w, b, vmem_budget_bytes=256 * 1024))
    ref = _se_ref(x, w, b)
    assert out.shape == x.shape and out.dtype == x.dtype
    assert jnp.allclose(out, ref, atol=2e-3, rtol=2e-3)

    print("KERNEL_OK")
</pallas_src>

<mosaic_0001>
module attributes {stable_mosaic.version = 11 : i64} {
  func.func @_se_fused_kernel(%arg0: i32, %arg1: memref<2x8x256xf32, #tpu.memory_space<vmem>>, %arg2: memref<8x8xbf16, #tpu.memory_space<vmem>>, %arg3: memref<1x8xf32, #tpu.memory_space<vmem>>, %arg4: memref<2x8x256xf32, #tpu.memory_space<vmem>>) attributes {dimension_semantics = [#tpu.dimension_semantics<parallel>], iteration_bounds = array<i64: 1>, scalar_prefetch = 0 : i64, scratch_operands = 0 : i64, tpu.core_type = #tpu.core_type<tc>, window_params = [{transform_indices = @transform_0, window_bounds = array<i64: 2, 8, 256>}, {pipeline_mode = #tpu.pipeline_mode<synchronous>, transform_indices = @transform_1, window_bounds = array<i64: 8, 8>}, {pipeline_mode = #tpu.pipeline_mode<synchronous>, transform_indices = @transform_2, window_bounds = array<i64: 1, 8>}, {transform_indices = @transform_3, window_bounds = array<i64: 2, 8, 256>}]} {
    %c0 = arith.constant 0 : index
    %c0_0 = arith.constant 0 : index
    %c0_1 = arith.constant 0 : index
    %0 = vector.load %arg1[%c0, %c0_0, %c0_1] : memref<2x8x256xf32, #tpu.memory_space<vmem>>, vector<2x8x256xf32>
    %cst = arith.constant dense<0.000000e+00> : vector<2x8xf32>
    %1 = vector.multi_reduction <add>, %0, %cst [2] : vector<2x8x256xf32> to vector<2x8xf32>
    %cst_2 = arith.constant 3.906250e-03 : f32
    %2 = vector.broadcast %cst_2 : f32 to vector<2x8xf32>
    %3 = arith.mulf %1, %2 : vector<2x8xf32>
    %4 = arith.truncf %3 : vector<2x8xf32> to vector<2x8xbf16>
    %c0_3 = arith.constant 0 : index
    %c0_4 = arith.constant 0 : index
    %5 = vector.load %arg2[%c0_3, %c0_4] : memref<8x8xbf16, #tpu.memory_space<vmem>>, vector<8x8xbf16>
    %cst_5 = arith.constant dense<0.000000e+00> : vector<2x8xf32>
    %6 = tpu.matmul %4, %5, %cst_5 {dimension_numbers = #tpu.dot_dimension_numbers<[1], [0], [0], [1], [0, 0, 1, 1], [], []>} : vector<2x8xbf16>, vector<8x8xbf16>, vector<2x8xf32> -> vector<2x8xf32>
    %c0_6 = arith.constant 0 : index
    %c0_7 = arith.constant 0 : index
    %7 = vector.load %arg3[%c0_6, %c0_7] : memref<1x8xf32, #tpu.memory_space<vmem>>, vector<1x8xf32>
    %8 = vector.broadcast %7 : vector<1x8xf32> to vector<2x8xf32>
    %9 = arith.addf %6, %8 : vector<2x8xf32>
    %10 = arith.negf %9 : vector<2x8xf32>
    %11 = math.exp %10 : vector<2x8xf32>
    %cst_8 = arith.constant 1.000000e+00 : f32
    %12 = vector.broadcast %cst_8 : f32 to vector<2x8xf32>
    %13 = arith.addf %12, %11 : vector<2x8xf32>
    %14 = arith.divf %12, %13 : vector<2x8xf32>
    %15 = vector.shape_cast %14 : vector<2x8xf32> to vector<2x8x1xf32>
    %c0_9 = arith.constant 0 : index
    %c0_10 = arith.constant 0 : index
    %c0_11 = arith.constant 0 : index
    %16 = vector.load %arg1[%c0_9, %c0_10, %c0_11] : memref<2x8x256xf32, #tpu.memory_space<vmem>>, vector<2x8x256xf32>
    %17 = vector.broadcast %15 : vector<2x8x1xf32> to vector<2x8x256xf32>
    %18 = arith.mulf %16, %17 : vector<2x8x256xf32>
    %c0_12 = arith.constant 0 : index
    %c0_13 = arith.constant 0 : index
    %c0_14 = arith.constant 0 : index
    %19 = vector.load %arg4[%c0_12, %c0_13, %c0_14] : memref<2x8x256xf32, #tpu.memory_space<vmem>>, vector<2x8x256xf32>
    tpu.vector_store %arg4[%c0_12, %c0_13, %c0_14], %18 {strides = array<i32>} : memref<2x8x256xf32, #tpu.memory_space<vmem>>, vector<2x8x256xf32>,
    return
  }
  func.func @transform_0(%arg0: i32) -> (i32, i32, i32) {
    %c0_i32 = arith.constant 0 : i32
    %c0_i32_0 = arith.constant 0 : i32
    %c0_i32_1 = arith.constant 0 : i32
    return %arg0, %c0_i32, %c0_i32_0 : i32, i32, i32
  }
  func.func @transform_1(%arg0: i32) -> (i32, i32) {
    %c0_i32 = arith.constant 0 : i32
    %c0_i32_0 = arith.constant 0 : i32
    %c0_i32_1 = arith.constant 0 : i32
    return %c0_i32, %c0_i32_0 : i32, i32
  }
  func.func @transform_2(%arg0: i32) -> (i32, i32) {
    %c0_i32 = arith.constant 0 : i32
    %c0_i32_0 = arith.constant 0 : i32
    %c0_i32_1 = arith.constant 0 : i32
    return %c0_i32, %c0_i32_0 : i32, i32
  }
  func.func @transform_3(%arg0: i32) -> (i32, i32, i32) {
    %c0_i32 = arith.constant 0 : i32
    %c0_i32_0 = arith.constant 0 : i32
    %c0_i32_1 = arith.constant 0 : i32
    return %arg0, %c0_i32, %c0_i32_0 : i32, i32, i32
  }
}

</mosaic_0001>

<bundles_post_ra>
// kernel: tpu_custom_call.1
= control target key start
LH: loop header
LB: loop body
LE: loop exit
PB: predicated region body
PF: predicated region fallthrough
CT: control target
= control target key end

     0   :  { %8 = vsyncpa [#allocation3], 0  ;;  %s301_s0 = inlined_call_operand.hbm [shape: f32[2,8,256], index: 0, kind: input, shape index: {}]   ;;  %s302_s1 = inlined_call_operand.hbm [shape: bf16[8,8], index: 1, kind: input, shape index: {}]   ;;  %s303_s2 = inlined_call_operand.vmem [shape: f32[1,8], index: 2, kind: input, shape index: {}]   ;;  %s304_s3 = inlined_call_operand.hbm [shape: f32[2,8,256], index: 3, kind: output, shape index: {}]  }
   0x1   :  { %9 = vsyncpa [#allocation6], 0 }
   0x2   :  { %10 = vsyncpa [#allocation4], 0  ;;  %s15_s14 = sshll.u32 %s301_s0, 4  ;;  %s250_s15 = smov [#allocation2]   ;;  %s16_s14 = int_to_ptr.hbm [resolvable:$true] %s15_s14 }
   0x3   :  { %s17_s16 = sshll.u32 %s250_s15, 4  ;;  %s29_s19 = sshll.u32 %s302_s1, 4  ;;  %s18_s16 = int_to_ptr.vmem [resolvable:$true] %s17_s16  ;;  %s30_s19 = int_to_ptr.hbm [resolvable:$true] %s29_s19 }
   0x4   :  { %s251_s20 = smov 256   ;;  %s252_s21 = smov 16  }
   0x5   :  { %23 = dma.hbm_to_vmem [thread:$0]  %s16_s14, 512, %s18_s16, [#allocation3], %s251_s20, %s251_s20, %s252_s21  }
   0x6   :  { %s253_s22 = smov [#allocation5]  }
   0x7   :  { %s31_s23 = sshll.u32 %s253_s22, 4  ;;  %s32_s23 = int_to_ptr.vmem [resolvable:$true] %s31_s23 }
   0x8   :  { %34 = dma.hbm_to_vmem [thread:$0]  %s30_s19, 64, %s32_s23, [#allocation6]  }
   0x9   :  { %244 = dma.done.wait [#allocation3], 512  }
   0xa   :  { %245 = vsyncadd [#allocation3], 4294966784 }
   0xb   :  { %246 = dma.done.wait [#allocation6], 64  }
   0xc   :  { %247 = vsyncadd [#allocation6], 4294967232  ;;  %v46_v0 = vld [vmem:[#allocation2] sm:$0xff]  ;;  %v47_v1 = vld [vmem:[#allocation2 + $0x8] sm:$0xff]  ;;  %vm80_vm0 = vcmask 1043456   ;;  %v69_v10 = vlaneseq  ;;  %vm73_vm1 = vcmask 1041409  }
   0xd   :  { %v50_v2 = vadd.f32 %v47_v1, %v46_v0  ;;  %v284_v3 = vld [vmem:[#allocation2 + $0x10] sm:$0xff]  ;;  %v286_v4 = vld [vmem:[#allocation2 + $0x18] sm:$0xff]  ;;  %v60_v6 = vld [vmem:[#allocation5] sm:$0xf]  ;;  %vm76_vm2 = vcmask 64512   ;;  %s144_s27 = sshll.u32 %s304_s3, 4  ;;  %s145_s27 = int_to_ptr.hbm [resolvable:$true] %s144_s27 }
   0xe   :  { %v53_v5 = vadd.f32 %v286_v4, %v284_v3  ;;  %v82_v7 = vsel %vm80_vm0, %v60_v6, 0  ;;  %v70_v14 = vand.u32 127, %v69_v10  ;;  %v118_v22 = vshrl.u32 %v69_v10, 7  ;;  %v167_v23 = vld [vmem:[%s303_s2] ss:$0 sm:$0xff]  ;;  %s254_s2 = smov [#allocation7]  }
   0xf   :  { %51 = vadd.xlane.f32.xlu0 %v50_v2  ;;  %91 = vmatpush.bf16.msra.mxu0 %v82_v7  ;;  %s142_s24 = sshll.u32 %s254_s2, 4  ;;  %s143_s24 = int_to_ptr.vmem [resolvable:$true] %s142_s24 }
  0x10   :  { %165 = vset.pattern.permute.xlu1 %v118_v22  ;;  %166 = vset.pattern.permute.xlu0 %v118_v22 }
  0x17   :  { %54 = vadd.xlane.f32.xlu0 %v53_v5 }
  0x82   :  { %v52_v8 = vpop.xlane.xlu0 %51 }
  0x83   :  { %v56_v9 = vmul.f32 0.00390625, %v52_v8 }
  0x85   :  { %v58_v11 = vpack.c.bf16 %v56_v9, %v56_v9 }
  0x87   :  { %v67_v15 = vunpack.c.l.b16 %v58_v11 }
  0x89   :  { %v71_v18 = vperm.slane %v67_v15, %v70_v14 }
  0x8a   :  { %v55_v12 = vpop.xlane.xlu0 %54 }
  0x8b   :  { %v57_v13 = vmul.f32 0.00390625, %v55_v12 }
  0x8d   :  { %v59_v16 = vpack.c.bf16 %v57_v13, %v57_v13 }
  0x8f   :  { %v68_v17 = vunpack.c.l.b16 %v59_v16 }
  0x91   :  { %v72_v19 = vperm.slane %v68_v17, %v70_v14 }
  0x93   :  { %v74_v20 = vsel %vm73_vm1, %v72_v19, %v71_v18 }
  0x94   :  { %v75_v21 = vpack.c.b16 %v74_v20, %v74_v20 }
  0x96   :  { %158 = vmatmul.msk.bf16.vlgmr.msra.gmra.mxu0 %vm76_vm2, %v75_v21 }
 0x113   :  { %v93_v24 = vpop.f32.mrf.mxu0 }
 0x114   :  { %v94_v25 = vadd.f32 %v167_v23, %v93_v24 }
 0x116   :  { %v159_v26 = vmul.f32 -1.442695, %v94_v25 }
 0x118   :  { %168 = vpow2.f32 %v159_v26 }
 0x11b   :  { %v95_v27 = vpop.f32.mrf.mxu0 }
 0x11e   :  { %v169_v28 = vpop.eup %168 }
 0x11f   :  { %v100_v29 = vadd.f32 1.0, %v169_v28 }
 0x121   :  { %170 = vrcp.f32 %v100_v29  ;;  %v112_v33 = vand.u32 2147483648, %v100_v29  ;;  %v110_v35 = vand.u32 2147483647, %v100_v29  ;;  %vm106_vm4 = vweird.f32 %v100_v29 }
 0x123   :  { %v113_v37 = vor.u32 1.1754944e-38, %v112_v33  ;;  %vm111_vm6 = vcmp.eq.f32.partialorder %v110_v35, 8.507059e+37 }
 0x127   :  { %v171_v30 = vpop.eup %170 }
 0x128   :  { %v102_v31 = vmul.f32 %v171_v30, %v100_v29  ;;  %vm107_vm3 = vweird.f32 %v171_v30 }
 0x129   :  { %vm108_vm5 = vmor %vm106_vm4, %vm107_vm3 }
 0x12a   :  { %v103_v32 = vsub.f32 1.0, %v102_v31 }
 0x12c   :  { %v104_v34 = vmul.f32 %v171_v30, %v103_v32 }
 0x12e   :  { %v105_v36 = vadd.f32 %v171_v30, %v104_v34 }
 0x130   :  { %v109_v38 = vsel %vm108_vm5, %v171_v30, %v105_v36 }
 0x131   :  { %v114_v39 = vsel %vm111_vm6, %v113_v37, %v109_v38 }
 0x132   :  { %v116_v40 = vperm.slane %v114_v39, 0  ;;  %v123_v41 = vperm.slane %v114_v39, 1 }
 0x134   :  { %121 = vperm.xlu1 %165, %v116_v40  }
 0x13c   :  { %128 = vperm.xlu1 %165, %v123_v41  }
 0x1a6   :  { %v122_v42 = vpop.permute.xlu1 %121 }
 0x1a7   :  { %v130_v43 = vmul.f32 %v122_v42, %v46_v0  ;;  %v131_v44 = vmul.f32 %v122_v42, %v47_v1 }
 0x1a9   :  { %134 = vst [vmem:[#allocation7] sm:$0xff] %v130_v43 }
 0x1aa   :  { %135 = vst [vmem:[#allocation7 + $0x8] sm:$0xff] %v131_v44 }
 0x1ae   :  { %v129_v45 = vpop.permute.xlu1 %128 }
 0x1af   :  { %v132_v46 = vmul.f32 %v129_v45, %v284_v3  ;;  %v133_v47 = vmul.f32 %v129_v45, %v286_v4 }
 0x1b1   :  { %136 = vst [vmem:[#allocation7 + $0x10] sm:$0xff] %v132_v46 }
 0x1b2   :  { %137 = vst [vmem:[#allocation7 + $0x18] sm:$0xff] %v133_v47 }
 0x1b3   :  { %150 = dma.vmem_to_hbm [thread:$0]  %s143_s24, 512, %s145_s27, [#allocation4], %s251_s20, %s251_s20, %s252_s21  }
 0x1b4   :  { %248 = dma.done.wait [#allocation4], 512  }
 0x1b5   :  { %249 = vsyncadd [#allocation4], 4294966784 }
 0x1b6   :  { %155 = vsyncpa [#allocation3], 1 }
 0x1b7   :  { %156 = vsyncpa [#allocation6], 1 }
 0x1b8   :  { %157 = vsyncpa [#allocation4], 1 }

</bundles_post_ra>
